<compile_context>
chip_gen: v5e
topology: v5e:2x2
jax: 0.10.0
libtpu: 0.0.40
codegen_flags: <defaults>
</compile_context>

<pallas_src>
import functools

import jax
import jax.numpy as jnp
from jax.experimental import pallas as pl
from jax.experimental.pallas import tpu as pltpu


def _round_up(n, m):
    return ((n + m - 1) // m) * m


def _make_ann_kernel(n_in):
    def kernel(xT_ref, w1_ref, b1_ref, w2t_ref, b2_ref, o_ref):
        # xT_ref:  (IN, TB)  f32   inputs, batch on the lane axis
        # w1_ref:  (Hp, IN)  f32   fc1 weight (PyTorch layout, H padded to x8)
        # b1_ref:  (Hp, 1)   f32   fc1 bias
        # w2t_ref: (Hp, 1)   f32   fc2 weight, transposed
        # b2_ref:  (1,)      f32   fc2 bias (SMEM scalar)
        # o_ref:   (1, TB)   f32   lane-dense output
        h = b1_ref[...]                                        # (Hp, 1)
        for j in range(n_in):                                  # static, K <= 2
            h = h + w1_ref[:, j:j + 1] * xT_ref[j:j + 1, :]    # VPU bcast-MAC
        h = jnp.maximum(h, 0.0)                                # ReLU (VPU)
        # fc2: elementwise multiply + one sublane reduction (XLU slot) + scalar bias.
        y = jnp.sum(w2t_ref[...] * h, axis=0, keepdims=True) + b2_ref[0]
        o_ref[...] = y.astype(o_ref.dtype)

    return kernel


def prepare_params(w1, b1, w2, b2):
    """One-time layout prep (hoisted out of the per-evaluation hot path)."""
    H, n_in = w1.shape
    Hp = _round_up(H, 8)  # sublane multiple; zero rows contribute 0 (relu(0)*0)
    w1p = jnp.zeros((Hp, n_in), jnp.float32).at[:H, :].set(w1.astype(jnp.float32))
    b1p = jnp.zeros((Hp, 1), jnp.float32).at[:H, 0].set(b1.astype(jnp.float32))
    w2tp = jnp.zeros((Hp, 1), jnp.float32).at[:H, 0].set(w2[0].astype(jnp.float32))
    b2p = b2.reshape(1).astype(jnp.float32)
    return w1p, b1p, w2tp, b2p


@functools.partial(jax.jit, static_argnames=("block_b",))
def ann_forward(x, params, block_b=None):
    """x: (B, IN) -> (B, 1), matching ANN.forward with encoding='both'."""
    w1p, b1p, w2tp, b2p = params
    B, n_in = x.shape
    Hp = w1p.shape[0]

    if block_b is None:
        block_b = min(512, _round_up(B, 128))  # lane-dense batch tile
    b_pad = _round_up(B, block_b)

    # Batch on the lane axis, zero-padded to the tile size.
    xT = jnp.zeros((n_in, b_pad), jnp.float32).at[:, :B].set(x.T.astype(jnp.float32))

    grid = (b_pad // block_b,)
    out = pl.pallas_call(
        _make_ann_kernel(n_in),
        out_shape=jax.ShapeDtypeStruct((1, b_pad), jnp.float32),
        grid_spec=pltpu.PrefetchScalarGridSpec(
            num_scalar_prefetch=0,
            grid=grid,
            in_specs=[
                pl.BlockSpec((n_in, block_b), lambda i: (0, i)),   # xT tile
                pl.BlockSpec((Hp, n_in), lambda i: (0, 0)),        # fc1 weight
                pl.BlockSpec((Hp, 1), lambda i: (0, 0)),           # fc1 bias
                pl.BlockSpec((Hp, 1), lambda i: (0, 0)),           # fc2 weight^T
                pl.BlockSpec(memory_space=pltpu.MemorySpace.SMEM),  # fc2 bias scalar
            ],
            out_specs=pl.BlockSpec((1, block_b), lambda i: (0, i)),
        ),
        compiler_params=pltpu.CompilerParams(
            dimension_semantics=("parallel",),
        ),
    )(xT, w1p, b1p, w2tp, b2p)
    return out[0, :B].reshape(B, 1)


def _reference(x, w1, b1, w2, b2):
    h = jnp.maximum(x @ w1.T + b1, 0.0)
    return h @ w2.T + b2


if __name__ == "__main__":
    key = jax.random.PRNGKey(0)
    k_x, k_w1, k_b1, k_w2, k_b2 = jax.random.split(key, 5)

    B = 8     # batch
    H = 32    # config['net']['hidden size']
    IN = 2    # encoding == 'both'

    x = jax.random.normal(k_x, (B, IN), dtype=jnp.float32)
    # Deterministic "Linear-like" init (uniform in +/- 1/sqrt(fan_in)).
    w1 = jax.random.uniform(k_w1, (H, IN), jnp.float32, -1.0, 1.0) / jnp.sqrt(IN)
    b1 = jax.random.uniform(k_b1, (H,), jnp.float32, -1.0, 1.0) / jnp.sqrt(IN)
    w2 = jax.random.uniform(k_w2, (1, H), jnp.float32, -1.0, 1.0) / jnp.sqrt(H)
    b2 = jax.random.uniform(k_b2, (1,), jnp.float32, -1.0, 1.0) / jnp.sqrt(H)

    params = prepare_params(w1, b1, w2, b2)   # hoisted: once per network
    out = ann_forward(x, params)
    out = jax.block_until_ready(out)

    ref = _reference(x, w1, b1, w2, b2)
    assert out.shape == (B, 1), out.shape
    assert jnp.allclose(out, ref, atol=1e-5, rtol=1e-5), (out, ref)

    print("KERNEL_OK")
</pallas_src>

<mosaic_0001>
module attributes {stable_mosaic.version = 11 : i64} {
  func.func @kernel(%arg0: i32, %arg1: memref<2x128xf32, #tpu.memory_space<vmem>>, %arg2: memref<32x2xf32, #tpu.memory_space<vmem>>, %arg3: memref<32x1xf32, #tpu.memory_space<vmem>>, %arg4: memref<32x1xf32, #tpu.memory_space<vmem>>, %arg5: memref<1xf32, #tpu.memory_space<smem>>, %arg6: memref<1x128xf32, #tpu.memory_space<vmem>>) attributes {dimension_semantics = [#tpu.dimension_semantics<parallel>], iteration_bounds = array<i64: 1>, scalar_prefetch = 0 : i64, scratch_operands = 0 : i64, tpu.core_type = #tpu.core_type<tc>, window_params = [{transform_indices = @transform_0, window_bounds = array<i64: 2, 128>}, {pipeline_mode = #tpu.pipeline_mode<synchronous>, transform_indices = @transform_1, window_bounds = array<i64: 32, 2>}, {pipeline_mode = #tpu.pipeline_mode<synchronous>, transform_indices = @transform_2, window_bounds = array<i64: 32, 1>}, {pipeline_mode = #tpu.pipeline_mode<synchronous>, transform_indices = @transform_3, window_bounds = array<i64: 32, 1>}, {transform_indices = @transform_4, window_bounds = array<i64: 1>}, {transform_indices = @transform_5, window_bounds = array<i64: 1, 128>}]} {
    %c0 = arith.constant 0 : index
    %c0_0 = arith.constant 0 : index
    %0 = vector.load %arg3[%c0, %c0_0] : memref<32x1xf32, #tpu.memory_space<vmem>>, vector<32x1xf32>
    %c0_1 = arith.constant 0 : index
    %c0_2 = arith.constant 0 : index
    %1 = vector.load %arg2[%c0_1, %c0_2] : memref<32x2xf32, #tpu.memory_space<vmem>>, vector<32x1xf32>
    %c0_3 = arith.constant 0 : index
    %c0_4 = arith.constant 0 : index
    %2 = vector.load %arg1[%c0_3, %c0_4] : memref<2x128xf32, #tpu.memory_space<vmem>>, vector<1x128xf32>
    %3 = vector.broadcast %1 : vector<32x1xf32> to vector<32x128xf32>
    %4 = vector.broadcast %2 : vector<1x128xf32> to vector<32x128xf32>
    %5 = arith.mulf %3, %4 : vector<32x128xf32>
    %6 = vector.broadcast %0 : vector<32x1xf32> to vector<32x128xf32>
    %7 = arith.addf %6, %5 : vector<32x128xf32>
    %c0_5 = arith.constant 0 : index
    %c1 = arith.constant 1 : index
    %8 = vector.load %arg2[%c0_5, %c1] : memref<32x2xf32, #tpu.memory_space<vmem>>, vector<32x1xf32>
    %c1_6 = arith.constant 1 : index
    %c0_7 = arith.constant 0 : index
    %9 = vector.load %arg1[%c1_6, %c0_7] : memref<2x128xf32, #tpu.memory_space<vmem>>, vector<1x128xf32>
    %10 = vector.broadcast %8 : vector<32x1xf32> to vector<32x128xf32>
    %11 = vector.broadcast %9 : vector<1x128xf32> to vector<32x128xf32>
    %12 = arith.mulf %10, %11 : vector<32x128xf32>
    %13 = arith.addf %7, %12 : vector<32x128xf32>
    %cst = arith.constant 0.000000e+00 : f32
    %14 = vector.broadcast %cst : f32 to vector<32x128xf32>
    %15 = arith.maximumf %13, %14 : vector<32x128xf32>
    %c0_8 = arith.constant 0 : index
    %c0_9 = arith.constant 0 : index
    %16 = vector.load %arg4[%c0_8, %c0_9] : memref<32x1xf32, #tpu.memory_space<vmem>>, vector<32x1xf32>
    %17 = vector.broadcast %16 : vector<32x1xf32> to vector<32x128xf32>
    %18 = arith.mulf %17, %15 : vector<32x128xf32>
    %cst_10 = arith.constant dense<0.000000e+00> : vector<128xf32>
    %19 = vector.multi_reduction <add>, %18, %cst_10 [0] : vector<32x128xf32> to vector<128xf32>
    %20 = vector.shape_cast %19 : vector<128xf32> to vector<1x128xf32>
    %c0_11 = arith.constant 0 : index
    %21 = memref.load %arg5[%c0_11] : memref<1xf32, #tpu.memory_space<smem>>
    %22 = vector.broadcast %21 : f32 to vector<1x128xf32>
    %23 = arith.addf %20, %22 : vector<1x128xf32>
    %c0_12 = arith.constant 0 : index
    %c0_13 = arith.constant 0 : index
    %24 = vector.load %arg6[%c0_12, %c0_13] : memref<1x128xf32, #tpu.memory_space<vmem>>, vector<1x128xf32>
    tpu.vector_store %arg6[%c0_12, %c0_13], %23 {strides = array<i32>} : memref<1x128xf32, #tpu.memory_space<vmem>>, vector<1x128xf32>,
    return
  }
  func.func @transform_0(%arg0: i32) -> (i32, i32) {
    %c0_i32 = arith.constant 0 : i32
    %c0_i32_0 = arith.constant 0 : i32
    return %c0_i32, %arg0 : i32, i32
  }
  func.func @transform_1(%arg0: i32) -> (i32, i32) {
    %c0_i32 = arith.constant 0 : i32
    %c0_i32_0 = arith.constant 0 : i32
    %c0_i32_1 = arith.constant 0 : i32
    return %c0_i32, %c0_i32_0 : i32, i32
  }
  func.func @transform_2(%arg0: i32) -> (i32, i32) {
    %c0_i32 = arith.constant 0 : i32
    %c0_i32_0 = arith.constant 0 : i32
    %c0_i32_1 = arith.constant 0 : i32
    return %c0_i32, %c0_i32_0 : i32, i32
  }
  func.func @transform_3(%arg0: i32) -> (i32, i32) {
    %c0_i32 = arith.constant 0 : i32
    %c0_i32_0 = arith.constant 0 : i32
    %c0_i32_1 = arith.constant 0 : i32
    return %c0_i32, %c0_i32_0 : i32, i32
  }
  func.func @transform_4(%arg0: i32) -> i32 {
    %c0_i32 = arith.constant 0 : i32
    %c0_i32_0 = arith.constant 0 : i32
    return %c0_i32 : i32
  }
  func.func @transform_5(%arg0: i32) -> (i32, i32) {
    %c0_i32 = arith.constant 0 : i32
    %c0_i32_0 = arith.constant 0 : i32
    return %c0_i32, %arg0 : i32, i32
  }
}

</mosaic_0001>

<bundles_post_ra>
// kernel: ann_forward.1
= control target key start
LH: loop header
LB: loop body
LE: loop exit
PB: predicated region body
PF: predicated region fallthrough
CT: control target
= control target key end

     0   :  { %v165_v0 = vmov 0   ;;  %v166_v8 = vmov 1   ;;  %s245_s2 = inlined_call_operand.vmem [shape: f32[32,1], index: 2, kind: input, shape index: {}]   ;;  %s246_s1 = inlined_call_operand.vmem [shape: f32[32,2], index: 1, kind: input, shape index: {}]   ;;  %s247_s0 = inlined_call_operand.vmem [shape: f32[2,128], index: 0, kind: input, shape index: {}]   ;;  %s248_s3 = inlined_call_operand.vmem [shape: f32[32,1], index: 3, kind: input, shape index: {}]   ;;  %s249_s4 = inlined_call_operand.<no memory space> [shape: f32[1], index: 4, kind: input, shape index: {}]   ;;  %s250_s5 = inlined_call_operand.vmem [shape: f32[1,128], index: 5, kind: output, shape index: {}]  }
   0x1   :  { %158 = vset.pattern.permute.xlu2 %v165_v0  ;;  %157 = vset.pattern.permute.xlu1 %v165_v0  ;;  %v21_v1 = vld [vmem:[%s245_s2] sm:$0xff]  ;;  %v27_v2 = vld [vmem:[%s246_s1 + $0x10] sm:$0xff]  ;;  %v22_v4 = vld [vmem:[%s245_s2 + $0x8] sm:$0xff] }
   0x2   :  { %v25_v3 = vld [vmem:[%s246_s1] sm:$0xff]  ;;  %156 = vset.pattern.permute.xlu0 %v165_v0  ;;  %57 = vperm.xlu2 %158, %v21_v1   ;;  %v28_v5 = vld [vmem:[%s246_s1 + $0x18] sm:$0xff]  ;;  %v26_v6 = vld [vmem:[%s246_s1 + $0x8] sm:$0xff] }
   0x3   :  { %42 = vperm.xlu1 %157, %v27_v2   ;;  %32 = vperm.xlu0 %156, %v25_v3   ;;  %v23_v7 = vld [vmem:[%s245_s2 + $0x10] sm:$0xff]  ;;  %v24_v9 = vld [vmem:[%s245_s2 + $0x18] sm:$0xff]  ;;  %v110_v10 = vld [vmem:[%s248_s3 + $0x8] sm:$0xff] }
   0x4   :  { %v109_v11 = vld [vmem:[%s248_s3] sm:$0xff]  ;;  %v111_v12 = vld [vmem:[%s248_s3 + $0x10] sm:$0xff]  ;;  %v112_v13 = vld [vmem:[%s248_s3 + $0x18] sm:$0xff] }
   0x5   :  { %v163_v23 = vld [vmem:[%s247_s0] ss:$0 sm:$0xff]  ;;  %v164_v24 = vld [vmem:[%s247_s0 + $0x1] ss:$0 sm:$0xff] }
   0xa   :  { %62 = vperm.xlu2 %158, %v22_v4  }
   0xb   :  { %47 = vperm.xlu1 %157, %v28_v5   ;;  %37 = vperm.xlu0 %156, %v26_v6  }
  0x12   :  { %67 = vperm.xlu2 %158, %v23_v7  }
  0x13   :  { %160 = vset.pattern.permute.xlu1 %v166_v8  ;;  %159 = vset.pattern.permute.xlu0 %v166_v8 }
  0x14   :  { %85 = vperm.xlu1 %160, %v26_v6   ;;  %81 = vperm.xlu0 %159, %v25_v3  }
  0x1a   :  { %72 = vperm.xlu2 %158, %v24_v9  }
  0x1c   :  { %89 = vperm.xlu1 %160, %v27_v2   ;;  %93 = vperm.xlu0 %159, %v28_v5  }
  0x22   :  { %120 = vperm.xlu2 %158, %v110_v10  }
  0x24   :  { %161 = vset.pattern.permute.xlu1 %v165_v0  ;;  %162 = vset.pattern.permute.xlu0 %v165_v0  ;;  %v147_v0 = vstv %s249_s4 }
  0x25   :  { %115 = vperm.xlu1 %161, %v109_v11   ;;  %125 = vperm.xlu0 %162, %v111_v12  }
  0x2d   :  { %130 = vperm.xlu1 %161, %v112_v13  }
  0x5c   :  { %v58_v14 = vpop.permute.xlu2 %57 }
  0x64   :  { %v63_v17 = vpop.permute.xlu2 %62 }
  0x6c   :  { %v68_v20 = vpop.permute.xlu2 %67 }
  0x74   :  { %v73_v30 = vpop.permute.xlu2 %72 }
  0x75   :  { %v43_v15 = vpop.permute.xlu1 %42  ;;  %v33_v16 = vpop.permute.xlu0 %32 }
  0x76   :  { %v51_v25 = vmul.f32 %v163_v23, %v33_v16  ;;  %v53_v34 = vmul.f32 %v163_v23, %v43_v15 }
  0x78   :  { %v75_v31 = vadd.f32 %v58_v14, %v51_v25  ;;  %v77_v39 = vadd.f32 %v68_v20, %v53_v34 }
  0x7c   :  { %v121_v47 = vpop.permute.xlu2 %120 }
  0x7d   :  { %v48_v18 = vpop.permute.xlu1 %47  ;;  %v38_v19 = vpop.permute.xlu0 %37 }
  0x7e   :  { %v52_v26 = vmul.f32 %v163_v23, %v38_v19  ;;  %v54_v37 = vmul.f32 %v163_v23, %v48_v18 }
  0x80   :  { %v76_v32 = vadd.f32 %v63_v17, %v52_v26  ;;  %v78_v44 = vadd.f32 %v73_v30, %v54_v37 }
  0x86   :  { %v86_v21 = vpop.permute.xlu1 %85  ;;  %v82_v22 = vpop.permute.xlu0 %81 }
  0x87   :  { %v98_v27 = vmul.f32 %v164_v24, %v86_v21  ;;  %v97_v28 = vmul.f32 %v164_v24, %v82_v22 }
  0x89   :  { %v102_v35 = vadd.f32 %v98_v27, %v76_v32  ;;  %v101_v36 = vadd.f32 %v97_v28, %v75_v31 }
  0x8b   :  { %v106_v40 = vmax.f32 %v102_v35, 0.0  ;;  %v105_v42 = vmax.f32 %v101_v36, 0.0 }
  0x8d   :  { %v134_v49 = vmul.f32 %v121_v47, %v106_v40 }
  0x8e   :  { %v90_v29 = vpop.permute.xlu1 %89  ;;  %v94_v33 = vpop.permute.xlu0 %93 }
  0x8f   :  { %v99_v38 = vmul.f32 %v164_v24, %v90_v29  ;;  %v100_v41 = vmul.f32 %v164_v24, %v94_v33 }
  0x91   :  { %v103_v45 = vadd.f32 %v99_v38, %v77_v39  ;;  %v104_v48 = vadd.f32 %v100_v41, %v78_v44 }
  0x93   :  { %v107_v52 = vmax.f32 %v103_v45, 0.0  ;;  %v108_v54 = vmax.f32 %v104_v48, 0.0 }
  0x97   :  { %v116_v43 = vpop.permute.xlu1 %115  ;;  %v126_v50 = vpop.permute.xlu0 %125 }
  0x98   :  { %v133_v46 = vmul.f32 %v116_v43, %v105_v42  ;;  %v135_v53 = vmul.f32 %v126_v50, %v107_v52 }
  0x9a   :  { %v137_v51 = vadd.f32 %v134_v49, %v133_v46 }
  0x9c   :  { %v138_v56 = vadd.f32 %v137_v51, %v135_v53 }
  0x9f   :  { %v131_v55 = vpop.permute.xlu1 %130 }
  0xa0   :  { %v136_v57 = vmul.f32 %v131_v55, %v108_v54 }
  0xa2   :  { %v139_v58 = vadd.f32 %v138_v56, %v136_v57 }
  0xa4   :  { %v140_v59 = vrot.slane %v139_v58, 4 }
  0xa6   :  { %v141_v60 = vadd.f32 %v140_v59, %v139_v58 }
  0xa8   :  { %v142_v61 = vrot.slane %v141_v60, 2 }
  0xaa   :  { %v143_v62 = vadd.f32 %v142_v61, %v141_v60 }
  0xac   :  { %v144_v63 = vrot.slane %v143_v62, 1 }
  0xae   :  { %v145_v1 = vadd.f32 %v144_v63, %v143_v62 }
  0xb0   :  { %v148_v2 = vadd.f32 %v147_v0, %v145_v1 }
  0xb2   :  { %149 = vst [vmem:[%s250_s5] sm:$0x1] %v148_v2 }

</bundles_post_ra>
